<compile_context>
chip_gen: v6e
topology: v6e:2x2x1
jax: 0.10.0
libtpu: 0.0.40
codegen_flags: <defaults>
</compile_context>

<pallas_src>
import copy
import functools
import math

import numpy as np
import jax
import jax.numpy as jnp
from jax.experimental import pallas as pl
from jax.experimental.pallas import tpu as pltpu

_LOG_2PI = float(np.log(2.0 * np.pi))
_EPS = 1e-8                      # rate clamp inside log()
_LANES = 128
_SUBLANE = 8
_TARGET_BLOCK_BYTES = 2 << 20    # ~2 MiB of VMEM per stream per pipeline buffer

SVLAE_LOSS_WEIGHT_DICT = {
    'kl_obs':     {'weight': 0.0, 'schedule_dur': 2000, 'schedule_start': 0,    'max': 1.0, 'min': 0.0},
    'kl_deep':    {'weight': 0.0, 'schedule_dur': 2000, 'schedule_start': 2000, 'max': 1.0, 'min': 0.0},
    'l2':         {'weight': 0.0, 'schedule_dur': 2000, 'schedule_start': 2000, 'max': 1.0, 'min': 0.0},
    'recon_deep': {'weight': 0.0, 'schedule_dur': 2000, 'schedule_start': 2000, 'max': 1.0, 'min': 0.0},
}


def _round_up(a, b):
    return (a + b - 1) // b * b


def _cdiv(a, b):
    return (a + b - 1) // b


def _lgamma1p(k):
    """lgamma(k + 1) for k >= 0.  Shift-by-6 recurrence + 3-term Stirling.

    Only two logs per element (log(w) and log of the 6-term product); rest is VPU work.
    Absolute error ~5e-9 at k=0, relatively accurate for all non-negative spike counts.
    """
    z = k + 1.0
    w = z + 6.0
    prod = z * (z + 1.0) * (z + 2.0) * (z + 3.0) * (z + 4.0) * (z + 5.0)
    rw = 1.0 / w
    rw2 = rw * rw
    series = rw * (1.0 / 12.0 - rw2 * (1.0 / 360.0 - rw2 * (1.0 / 1260.0)))
    return (w - 0.5) * jnp.log(w) - w + 0.5 * _LOG_2PI + series - jnp.log(prod)


# ----------------------------------------------------------------------------------------
# Kernel
# ----------------------------------------------------------------------------------------
def _svlae_reduce_kernel(num_tiles, tile_rows, n_rows, has_tail, eps,
                         # inputs (lane-dense (rows, 128) streams + resident small slabs)
                         x_ref, xr_ref, spk_ref, rate_ref,
                         kl_obs_ref, kl_deep_ref,
                         gw1_ref, gw2_ref, cw1_ref, cw2_ref,
                         # output: one (8,128) block, partial sums in row 0 lanes 0..10
                         out_ref,
                         # scratch accumulators (persist across the 'arbitrary' grid axis)
                         acc_d2, acc_sl, acc_s, acc_r, acc_lg):
    k = pl.program_id(0)
    accs = (acc_d2, acc_sl, acc_s, acc_r, acc_lg)

    @pl.when(k == 0)
    def _init():
        for acc in accs:
            acc[...] = jnp.zeros_like(acc)

    x = x_ref[...].astype(jnp.float32)
    xr = xr_ref[...].astype(jnp.float32)
    spk = spk_ref[...].astype(jnp.float32)
    rate = rate_ref[...].astype(jnp.float32)

    acc_rows = acc_d2.shape[0]

    def _fold(v):
        # Sublane/lane-aligned partial reduction into a full-vreg accumulator; the final
        # cross-sublane / cross-lane collapse happens once, in the finalize step.
        if acc_rows == _SUBLANE:
            return jnp.sum(v.reshape(-1, _SUBLANE, _LANES), axis=0)
        return jnp.sum(v, axis=0, keepdims=True)

    def _accumulate(xv, xrv, spkv, ratev, lgv):
        d = xv - xrv
        acc_d2[...] += _fold(d * d)
        acc_sl[...] += _fold(spkv * jnp.log(ratev + eps))
        acc_s[...] += _fold(spkv)
        acc_r[...] += _fold(ratev)
        acc_lg[...] += _fold(lgv)

    if has_tail:
        # Hot path: no masking work in the steady state.
        @pl.when(k != num_tiles - 1)
        def _hot():
            _accumulate(x, xr, spk, rate, _lgamma1p(spk))

        # Tail path: mask rows past the logical end of the (n_rows, 128) slab (undefined
        # data from the partial trailing block).  Runs once.
        @pl.when(k == num_tiles - 1)
        def _tail():
            valid = n_rows - (num_tiles - 1) * tile_rows
            row = jax.lax.broadcasted_iota(jnp.int32, x.shape, 0)
            m = row < valid
            z = jnp.zeros_like(x)
            xm = jnp.where(m, x, z)
            xrm = jnp.where(m, xr, z)
            sm = jnp.where(m, spk, z)
            rm = jnp.where(m, rate, z)
            lg = jnp.where(m, _lgamma1p(sm), z)   # lgamma(1) ~ 5e-9: mask it to exact 0
            _accumulate(xm, xrm, sm, rm, lg)
    else:
        _accumulate(x, xr, spk, rate, _lgamma1p(spk))

    @pl.when(k == num_tiles - 1)
    def _finalize():
        def _kl_sum(ref):
            kl = ref[...]
            q_mu, q_lv = kl[0:1, :], kl[1:2, :]      # posterior
            p_mu, p_lv = kl[2:3, :], kl[3:4, :]      # prior (already broadcast to batch)
            term = (p_lv - q_lv + jnp.exp(q_lv - p_lv)
                    + (q_mu - p_mu) ** 2 * jnp.exp(-p_lv) - 1.0)
            return jnp.sum(term)                     # zero padding contributes exactly 0

        def _sq_sum(ref):
            w = ref[...]
            return jnp.sum(w * w)

        vals = (jnp.sum(acc_d2[...]), jnp.sum(acc_sl[...]), jnp.sum(acc_s[...]),
                jnp.sum(acc_r[...]), jnp.sum(acc_lg[...]),
                _kl_sum(kl_obs_ref), _kl_sum(kl_deep_ref),
                _sq_sum(gw1_ref), _sq_sum(gw2_ref),
                _sq_sum(cw1_ref), _sq_sum(cw2_ref))

        rows8 = jax.lax.broadcasted_iota(jnp.int32, (_SUBLANE, _LANES), 0)
        lanes8 = jax.lax.broadcasted_iota(jnp.int32, (_SUBLANE, _LANES), 1)
        blk = jnp.zeros((_SUBLANE, _LANES), jnp.float32)
        for i, v in enumerate(vals):
            blk = jnp.where((rows8 == 0) & (lanes8 == i), v, blk)
        out_ref[...] = blk


# ----------------------------------------------------------------------------------------
# Host-side packing helpers
# ----------------------------------------------------------------------------------------
def _flat_lanes(a):
    """(..., ) -> lane-dense (rows, 128) view.  Zero-copy when numel % 128 == 0; otherwise
    a tiny zero pad (zeros are exactly neutral for every reduced quantity)."""
    flat = a.reshape(-1)
    n = int(flat.shape[0])
    pad = (-n) % _LANES
    if pad:
        flat = jnp.pad(flat, (0, pad))
    return flat.reshape(-1, _LANES)


def _weight_slab(w):
    flat = jnp.asarray(w, jnp.float32).reshape(-1)
    n = int(flat.shape[0])
    pad = _round_up(n, _LANES) - n
    if pad:
        flat = jnp.pad(flat, (0, pad))               # zeros: neutral for sum-of-squares
    return flat.reshape(-1, _LANES)


def _kl_pack(post_mu, post_lv, prior_mu, prior_lv):
    b, d = int(post_mu.shape[0]), int(post_mu.shape[1])
    p = _round_up(b * d, _LANES)

    def _row(a):
        flat = jnp.asarray(a, jnp.float32).reshape(-1)
        n = int(flat.shape[0])
        if n != p:
            flat = jnp.pad(flat, (0, p - n))
        return flat

    prior_mu_b = jnp.broadcast_to(jnp.asarray(prior_mu, jnp.float32).reshape(1, d), (b, d))
    prior_lv_b = jnp.broadcast_to(jnp.asarray(prior_lv, jnp.float32).reshape(1, d), (b, d))
    # zero padding is exactly neutral for the KL formula: 0 - 0 + exp(0) + 0 - 1 == 0
    return jnp.stack([_row(post_mu), _row(post_lv), _row(prior_mu_b), _row(prior_lv_b)], axis=0)


# ----------------------------------------------------------------------------------------
# Fused loss-terms computation
# ----------------------------------------------------------------------------------------
@functools.partial(jax.jit, static_argnames=("dt",))
def svlae_loss_terms(x_orig, x_recon_data, obs_logvar, spikes_tbc, rates_tbc,
                     obs_post_mu, obs_post_logvar, obs_prior_mu, obs_prior_logvar,
                     deep_post_mu, deep_post_logvar, deep_prior_mu, deep_prior_logvar,
                     gen_w_hru, gen_w_hc, con_w_hru, con_w_hc, dt=1.0):
    """Returns the 6 unweighted loss terms as f32 device scalars."""
    batch = int(x_orig.shape[0])
    n_obs_elems = int(np.prod(x_orig.shape))
    assert int(np.prod(x_recon_data.shape)) == n_obs_elems
    assert int(np.prod(spikes_tbc.shape)) == n_obs_elems
    assert int(np.prod(rates_tbc.shape)) == n_obs_elems

    # Lane-dense 2-D views (element ordering is irrelevant: all reductions are global sums
    # scaled by a constant).  The PyTorch (T,B,C)->(B,T,C) permute is skipped for the same
    # reason (no XLA transpose).
    x2 = _flat_lanes(x_orig)
    xr2 = _flat_lanes(x_recon_data)
    spk2 = _flat_lanes(spikes_tbc)
    rate2 = _flat_lanes(rates_tbc)
    n_rows = int(x2.shape[0])

    # --- tiling geometry: grid = (num_tiles 'arbitrary') --------------------------------
    # rows_cap is a multiple of 32 so bf16/int8 sublane packing stays aligned.
    rows_cap = max(_SUBLANE, (_TARGET_BLOCK_BYTES // (_LANES * 4)) // 32 * 32)
    tile_rows = n_rows if n_rows <= rows_cap else rows_cap
    num_tiles = _cdiv(n_rows, tile_rows)
    has_tail = (n_rows % tile_rows) != 0
    acc_rows = _SUBLANE if (tile_rows % _SUBLANE == 0) else 1

    big_spec = pl.BlockSpec((tile_rows, _LANES), lambda k: (k, 0))

    def _resident_spec(a):
        return pl.BlockSpec(tuple(int(s) for s in a.shape), lambda k: (0, 0))

    kl_obs_pack = _kl_pack(obs_post_mu, obs_post_logvar, obs_prior_mu, obs_prior_logvar)
    kl_deep_pack = _kl_pack(deep_post_mu, deep_post_logvar, deep_prior_mu, deep_prior_logvar)
    gw1, gw2 = _weight_slab(gen_w_hru), _weight_slab(gen_w_hc)
    cw1, cw2 = _weight_slab(con_w_hru), _weight_slab(con_w_hc)

    kernel = functools.partial(_svlae_reduce_kernel, num_tiles, tile_rows, n_rows,
                               has_tail, _EPS)

    out = pl.pallas_call(
        kernel,
        out_shape=jax.ShapeDtypeStruct((_SUBLANE, _LANES), jnp.float32),
        grid=(num_tiles,),
        in_specs=[big_spec, big_spec, big_spec, big_spec,
                  _resident_spec(kl_obs_pack), _resident_spec(kl_deep_pack),
                  _resident_spec(gw1), _resident_spec(gw2),
                  _resident_spec(cw1), _resident_spec(cw2)],
        out_specs=pl.BlockSpec((_SUBLANE, _LANES), lambda k: (0, 0)),
        scratch_shapes=[pltpu.VMEM((acc_rows, _LANES), jnp.float32)] * 5,
        compiler_params=pltpu.CompilerParams(
            dimension_semantics=("arbitrary",),
            vmem_limit_bytes=48 * 1024 * 1024),
    )(x2, xr2, spk2, rate2, kl_obs_pack, kl_deep_pack, gw1, gw2, cw1, cw2)

    s = out[0]
    sum_d2, sum_sl, sum_s, sum_r, lgamma_sum = s[0], s[1], s[2], s[3], s[4]
    kl_obs_sum, kl_deep_sum = s[5], s[6]
    gsq1, gsq2, csq1, csq2 = s[7], s[8], s[9], s[10]

    inv_b = 1.0 / float(batch)
    logvar = jnp.asarray(obs_logvar, jnp.float32)
    log_dt = float(math.log(dt))

    # recon_obs = -Gaussian LL (scalar logvar): closed form for the constant part.
    recon_obs = 0.5 * inv_b * (n_obs_elems * (_LOG_2PI + logvar)
                               + jnp.exp(-logvar) * sum_d2)
    # recon_deep = -Poisson LL (decomposed: log(rate*dt) = log(rate+eps) + log(dt)).
    recon_deep = inv_b * (float(dt) * sum_r - log_dt * sum_s - sum_sl + lgamma_sum)
    kl_obs = 0.5 * inv_b * kl_obs_sum
    kl_deep = 0.5 * inv_b * kl_deep_sum
    gen_l2 = gsq1 / float(np.prod(gen_w_hru.shape)) + gsq2 / float(np.prod(gen_w_hc.shape))
    con_l2 = csq1 / float(np.prod(con_w_hru.shape)) + csq2 / float(np.prod(con_w_hc.shape))
    return recon_obs, recon_deep, kl_obs, kl_deep, gen_l2, con_l2


# ----------------------------------------------------------------------------------------
# Pure-JAX reference (used only for the correctness check in __main__)
# ----------------------------------------------------------------------------------------
def _reference_loss_terms(x_orig, x_recon_data, obs_logvar, spikes_tbc, rates_tbc,
                          obs_post_mu, obs_post_logvar, obs_prior_mu, obs_prior_logvar,
                          deep_post_mu, deep_post_logvar, deep_prior_mu, deep_prior_logvar,
                          gen_w_hru, gen_w_hc, con_w_hru, con_w_hc, dt=1.0):
    f = lambda a: jnp.asarray(a, jnp.float32)
    x, xr = f(x_orig), f(x_recon_data)
    b = x.shape[0]
    lv = f(obs_logvar)
    recon_obs = 0.5 / b * jnp.sum(_LOG_2PI + lv + (x - xr) ** 2 * jnp.exp(-lv))
    spk, rate = f(spikes_tbc), f(rates_tbc)
    ll = spk * jnp.log(rate * dt) - rate * dt - jax.scipy.special.gammaln(spk + 1.0)
    recon_deep = -jnp.sum(ll) / b

    def kl(qm, qlv, pm, plv):
        qm, qlv = f(qm), f(qlv)
        pm = jnp.broadcast_to(f(pm), qm.shape)
        plv = jnp.broadcast_to(f(plv), qlv.shape)
        return 0.5 / b * jnp.sum(plv - qlv + jnp.exp(qlv - plv)
                                 + (qm - pm) ** 2 * jnp.exp(-plv) - 1.0)

    def l2(w1, w2):
        return jnp.sum(f(w1) ** 2) / w1.size + jnp.sum(f(w2) ** 2) / w2.size

    return (recon_obs, recon_deep,
            kl(obs_post_mu, obs_post_logvar, obs_prior_mu, obs_prior_logvar),
            kl(deep_post_mu, deep_post_logvar, deep_prior_mu, deep_prior_logvar),
            l2(gen_w_hru, gen_w_hc), l2(con_w_hru, con_w_hc))


# ----------------------------------------------------------------------------------------
# Module-level wrapper (mirrors models/objective.py::SVLAE_Loss forward semantics)
# ----------------------------------------------------------------------------------------
class SVLAE_Loss:
    def __init__(self, loss_weight_dict=None, l2_con_scale=0.0, l2_gen_scale=0.0, dt=1.0):
        self.loss_weights = copy.deepcopy(loss_weight_dict or SVLAE_LOSS_WEIGHT_DICT)
        self.l2_con_scale = l2_con_scale
        self.l2_gen_scale = l2_gen_scale
        self.dt = dt

    def weight_schedule_fn(self, step):
        for key in self.loss_weights.keys():
            w = self.loss_weights[key]
            weight_step = max(step - w['schedule_start'], 0)
            w['weight'] = max(min(w['max'] * weight_step / w['schedule_dur'], w['max']), w['min'])

    def any_zero_weights(self):
        for _, val in self.loss_weights.items():
            if val['weight'] == 0:
                return True
        return False

    def forward(self, x_orig, x_recon, model):
        kl_obs_weight = self.loss_weights['kl_obs']['weight']
        kl_deep_weight = self.loss_weights['kl_deep']['weight']
        l2_weight = self.loss_weights['l2']['weight']
        recon_deep_weight = self.loss_weights['recon_deep']['weight']

        ro, rd, ko, kd, gl2, cl2 = svlae_loss_terms(
            x_orig, x_recon['data'], model['obs_logvar'],
            x_recon['spikes'], x_recon['rates'],
            model['obs_post_mu'], model['obs_post_logvar'],
            model['obs_prior_mu'], model['obs_prior_logvar'],
            model['deep_post_mu'], model['deep_post_logvar'],
            model['deep_prior_mu'], model['deep_prior_logvar'],
            model['gen_w_hru'], model['gen_w_hc'],
            model['con_w_hru'], model['con_w_hc'],
            dt=self.dt)

        recon_obs_loss = ro
        recon_deep_loss = recon_deep_weight * rd
        kl_obs_loss = kl_obs_weight * ko
        kl_deep_loss = kl_deep_weight * kd
        l2_loss = 0.5 * l2_weight * self.l2_gen_scale * gl2
        # model has a controller -> add its hidden-weight norm (mirrors the hasattr branch)
        l2_loss = l2_loss + 0.5 * l2_weight * self.l2_con_scale * cl2

        loss = recon_obs_loss + recon_deep_loss + kl_obs_loss + kl_deep_loss + l2_loss
        # Device scalars (no host sync here); call float() only when actually logging.
        loss_dict = {'recon_obs': recon_obs_loss,
                     'recon_deep': recon_deep_loss,
                     'kl_obs': kl_obs_loss,
                     'kl_deep': kl_deep_loss,
                     'l2': l2_loss,
                     'total': loss}
        return loss, loss_dict

    __call__ = forward


if __name__ == "__main__":
    key = jax.random.PRNGKey(0)
    B, T, C = 2, 8, 16          # batch, timesteps, cells
    D_OBS, D_DEEP = 32, 16      # obs / deep latent (g0) dims
    G_GEN, G_CON = 32, 16       # generator / controller GRU hidden sizes
    keys = jax.random.split(key, 14)

    x_orig = jax.random.normal(keys[0], (B, T, C), jnp.float32)
    x_recon = {
        'data':   x_orig + 0.1 * jax.random.normal(keys[1], (B, T, C), jnp.float32),
        'spikes': jnp.abs(jax.random.normal(keys[2], (T, B, C), jnp.float32)),
        'rates':  jax.nn.softplus(jax.random.normal(keys[3], (T, B, C), jnp.float32)) + 1e-3,
    }

    # Deterministic synthetic "model" state (obs/deep posteriors, priors, GRU hidden weights).
    model = {
        'obs_logvar':        jnp.log(jnp.float32(0.1)),
        'obs_post_mu':       0.1 * jax.random.normal(keys[4], (B, D_OBS), jnp.float32),
        'obs_post_logvar':  -1.0 + 0.1 * jax.random.normal(keys[5], (B, D_OBS), jnp.float32),
        'obs_prior_mu':      jnp.zeros((D_OBS,), jnp.float32),
        'obs_prior_logvar':  jnp.zeros((D_OBS,), jnp.float32),
        'deep_post_mu':      0.1 * jax.random.normal(keys[6], (B, D_DEEP), jnp.float32),
        'deep_post_logvar': -1.0 + 0.1 * jax.random.normal(keys[7], (B, D_DEEP), jnp.float32),
        'deep_prior_mu':     jnp.zeros((D_DEEP,), jnp.float32),
        'deep_prior_logvar': jnp.zeros((D_DEEP,), jnp.float32),
        'gen_w_hru':         0.1 * jax.random.normal(keys[8],  (2 * G_GEN, G_GEN), jnp.float32),
        'gen_w_hc':          0.1 * jax.random.normal(keys[9],  (G_GEN, G_GEN), jnp.float32),
        'con_w_hru':         0.1 * jax.random.normal(keys[10], (2 * G_CON, G_CON), jnp.float32),
        'con_w_hc':          0.1 * jax.random.normal(keys[11], (G_CON, G_CON), jnp.float32),
    }

    args = (x_orig, x_recon['data'], model['obs_logvar'],
            x_recon['spikes'], x_recon['rates'],
            model['obs_post_mu'], model['obs_post_logvar'],
            model['obs_prior_mu'], model['obs_prior_logvar'],
            model['deep_post_mu'], model['deep_post_logvar'],
            model['deep_prior_mu'], model['deep_prior_logvar'],
            model['gen_w_hru'], model['gen_w_hc'],
            model['con_w_hru'], model['con_w_hc'])

    got = svlae_loss_terms(*args, dt=1.0)
    jax.block_until_ready(got)
    want = _reference_loss_terms(*args, dt=1.0)
    names = ("recon_obs", "recon_deep", "kl_obs", "kl_deep", "gen_l2", "con_l2")
    for name, g, w in zip(names, got, want):
        np.testing.assert_allclose(float(g), float(w), rtol=2e-3, atol=2e-3, err_msg=name)

    loss_fn = SVLAE_Loss(l2_gen_scale=0.1, l2_con_scale=0.1, dt=1.0)
    loss_fn.weight_schedule_fn(4000)   # all schedules fully ramped -> weights = 1.0

    loss, loss_dict = loss_fn(x_orig, x_recon, model)
    jax.block_until_ready(loss)
    assert np.isfinite(float(loss_dict['total']))   # single host sync, logging path only
    print("KERNEL_OK")
</pallas_src>

<mosaic_0001>
module attributes {stable_mosaic.version = 11 : i64} {
  func.func @_svlae_reduce_kernel(%arg0: i32, %arg1: memref<2x128xf32, #tpu.memory_space<vmem>>, %arg2: memref<2x128xf32, #tpu.memory_space<vmem>>, %arg3: memref<2x128xf32, #tpu.memory_space<vmem>>, %arg4: memref<2x128xf32, #tpu.memory_space<vmem>>, %arg5: memref<4x128xf32, #tpu.memory_space<vmem>>, %arg6: memref<4x128xf32, #tpu.memory_space<vmem>>, %arg7: memref<16x128xf32, #tpu.memory_space<vmem>>, %arg8: memref<8x128xf32, #tpu.memory_space<vmem>>, %arg9: memref<4x128xf32, #tpu.memory_space<vmem>>, %arg10: memref<2x128xf32, #tpu.memory_space<vmem>>, %arg11: memref<8x128xf32, #tpu.memory_space<vmem>>, %arg12: memref<1x128xf32, #tpu.memory_space<vmem>>, %arg13: memref<1x128xf32, #tpu.memory_space<vmem>>, %arg14: memref<1x128xf32, #tpu.memory_space<vmem>>, %arg15: memref<1x128xf32, #tpu.memory_space<vmem>>, %arg16: memref<1x128xf32, #tpu.memory_space<vmem>>) attributes {dimension_semantics = [#tpu.dimension_semantics<arbitrary>], iteration_bounds = array<i64: 1>, scalar_prefetch = 0 : i64, scratch_operands = 5 : i64, tpu.core_type = #tpu.core_type<tc>, window_params = [{transform_indices = @transform_0, window_bounds = array<i64: 2, 128>}, {transform_indices = @transform_1, window_bounds = array<i64: 2, 128>}, {transform_indices = @transform_2, window_bounds = array<i64: 2, 128>}, {transform_indices = @transform_3, window_bounds = array<i64: 2, 128>}, {pipeline_mode = #tpu.pipeline_mode<synchronous>, transform_indices = @transform_4, window_bounds = array<i64: 4, 128>}, {pipeline_mode = #tpu.pipeline_mode<synchronous>, transform_indices = @transform_5, window_bounds = array<i64: 4, 128>}, {pipeline_mode = #tpu.pipeline_mode<synchronous>, transform_indices = @transform_6, window_bounds = array<i64: 16, 128>}, {pipeline_mode = #tpu.pipeline_mode<synchronous>, transform_indices = @transform_7, window_bounds = array<i64: 8, 128>}, {pipeline_mode = #tpu.pipeline_mode<synchronous>, transform_indices = @transform_8, window_bounds = array<i64: 4, 128>}, {pipeline_mode = #tpu.pipeline_mode<synchronous>, transform_indices = @transform_9, window_bounds = array<i64: 2, 128>}, {pipeline_mode = #tpu.pipeline_mode<synchronous>, transform_indices = @transform_10, window_bounds = array<i64: 8, 128>}]} {
    %c0_i32 = arith.constant 0 : i32
    %0 = arith.cmpi eq, %arg0, %c0_i32 : i32
    %1 = arith.extui %0 : i1 to i32
    %c0_i32_0 = arith.constant 0 : i32
    %2 = arith.cmpi ne, %1, %c0_i32_0 : i32
    scf.if %2 {
      %cst_48 = arith.constant 0.000000e+00 : f32
      %81 = vector.broadcast %cst_48 : f32 to vector<1x128xf32>
      %c0_49 = arith.constant 0 : index
      %c0_50 = arith.constant 0 : index
      %82 = vector.load %arg12[%c0_49, %c0_50] : memref<1x128xf32, #tpu.memory_space<vmem>>, vector<1x128xf32>
      tpu.vector_store %arg12[%c0_49, %c0_50], %81 {strides = array<i32>} : memref<1x128xf32, #tpu.memory_space<vmem>>, vector<1x128xf32>,
      %cst_51 = arith.constant 0.000000e+00 : f32
      %83 = vector.broadcast %cst_51 : f32 to vector<1x128xf32>
      %c0_52 = arith.constant 0 : index
      %c0_53 = arith.constant 0 : index
      %84 = vector.load %arg13[%c0_52, %c0_53] : memref<1x128xf32, #tpu.memory_space<vmem>>, vector<1x128xf32>
      tpu.vector_store %arg13[%c0_52, %c0_53], %83 {strides = array<i32>} : memref<1x128xf32, #tpu.memory_space<vmem>>, vector<1x128xf32>,
      %cst_54 = arith.constant 0.000000e+00 : f32
      %85 = vector.broadcast %cst_54 : f32 to vector<1x128xf32>
      %c0_55 = arith.constant 0 : index
      %c0_56 = arith.constant 0 : index
      %86 = vector.load %arg14[%c0_55, %c0_56] : memref<1x128xf32, #tpu.memory_space<vmem>>, vector<1x128xf32>
      tpu.vector_store %arg14[%c0_55, %c0_56], %85 {strides = array<i32>} : memref<1x128xf32, #tpu.memory_space<vmem>>, vector<1x128xf32>,
      %cst_57 = arith.constant 0.000000e+00 : f32
      %87 = vector.broadcast %cst_57 : f32 to vector<1x128xf32>
      %c0_58 = arith.constant 0 : index
      %c0_59 = arith.constant 0 : index
      %88 = vector.load %arg15[%c0_58, %c0_59] : memref<1x128xf32, #tpu.memory_space<vmem>>, vector<1x128xf32>
      tpu.vector_store %arg15[%c0_58, %c0_59], %87 {strides = array<i32>} : memref<1x128xf32, #tpu.memory_space<vmem>>, vector<1x128xf32>,
      %cst_60 = arith.constant 0.000000e+00 : f32
      %89 = vector.broadcast %cst_60 : f32 to vector<1x128xf32>
      %c0_61 = arith.constant 0 : index
      %c0_62 = arith.constant 0 : index
      %90 = vector.load %arg16[%c0_61, %c0_62] : memref<1x128xf32, #tpu.memory_space<vmem>>, vector<1x128xf32>
      tpu.vector_store %arg16[%c0_61, %c0_62], %89 {strides = array<i32>} : memref<1x128xf32, #tpu.memory_space<vmem>>, vector<1x128xf32>,
    } else {
    }
    %c0 = arith.constant 0 : index
    %c0_1 = arith.constant 0 : index
    %3 = vector.load %arg1[%c0, %c0_1] : memref<2x128xf32, #tpu.memory_space<vmem>>, vector<2x128xf32>
    %c0_2 = arith.constant 0 : index
    %c0_3 = arith.constant 0 : index
    %4 = vector.load %arg2[%c0_2, %c0_3] : memref<2x128xf32, #tpu.memory_space<vmem>>, vector<2x128xf32>
    %c0_4 = arith.constant 0 : index
    %c0_5 = arith.constant 0 : index
    %5 = vector.load %arg3[%c0_4, %c0_5] : memref<2x128xf32, #tpu.memory_space<vmem>>, vector<2x128xf32>
    %c0_6 = arith.constant 0 : index
    %c0_7 = arith.constant 0 : index
    %6 = vector.load %arg4[%c0_6, %c0_7] : memref<2x128xf32, #tpu.memory_space<vmem>>, vector<2x128xf32>
    %cst = arith.constant 1.000000e+00 : f32
    %7 = vector.broadcast %cst : f32 to vector<2x128xf32>
    %8 = arith.addf %5, %7 : vector<2x128xf32>
    %cst_8 = arith.constant 6.000000e+00 : f32
    %9 = vector.broadcast %cst_8 : f32 to vector<2x128xf32>
    %10 = arith.addf %8, %9 : vector<2x128xf32>
    %cst_9 = arith.constant 1.000000e+00 : f32
    %11 = vector.broadcast %cst_9 : f32 to vector<2x128xf32>
    %12 = arith.addf %8, %11 : vector<2x128xf32>
    %13 = arith.mulf %8, %12 : vector<2x128xf32>
    %cst_10 = arith.constant 2.000000e+00 : f32
    %14 = vector.broadcast %cst_10 : f32 to vector<2x128xf32>
    %15 = arith.addf %8, %14 : vector<2x128xf32>
    %16 = arith.mulf %13, %15 : vector<2x128xf32>
    %cst_11 = arith.constant 3.000000e+00 : f32
    %17 = vector.broadcast %cst_11 : f32 to vector<2x128xf32>
    %18 = arith.addf %8, %17 : vector<2x128xf32>
    %19 = arith.mulf %16, %18 : vector<2x128xf32>
    %cst_12 = arith.constant 4.000000e+00 : f32
    %20 = vector.broadcast %cst_12 : f32 to vector<2x128xf32>
    %21 = arith.addf %8, %20 : vector<2x128xf32>
    %22 = arith.mulf %19, %21 : vector<2x128xf32>
    %cst_13 = arith.constant 5.000000e+00 : f32
    %23 = vector.broadcast %cst_13 : f32 to vector<2x128xf32>
    %24 = arith.addf %8, %23 : vector<2x128xf32>
    %25 = arith.mulf %22, %24 : vector<2x128xf32>
    %cst_14 = arith.constant 1.000000e+00 : f32
    %26 = vector.broadcast %cst_14 : f32 to vector<2x128xf32>
    %27 = arith.divf %26, %10 : vector<2x128xf32>
    %28 = arith.mulf %27, %27 : vector<2x128xf32>
    %cst_15 = arith.constant 7.93650805E-4 : f32
    %29 = vector.broadcast %cst_15 : f32 to vector<2x128xf32>
    %30 = arith.mulf %28, %29 : vector<2x128xf32>
    %cst_16 = arith.constant 0.00277777785 : f32
    %31 = vector.broadcast %cst_16 : f32 to vector<2x128xf32>
    %32 = arith.subf %31, %30 : vector<2x128xf32>
    %33 = arith.mulf %28, %32 : vector<2x128xf32>
    %cst_17 = arith.constant 0.0833333358 : f32
    %34 = vector.broadcast %cst_17 : f32 to vector<2x128xf32>
    %35 = arith.subf %34, %33 : vector<2x128xf32>
    %36 = arith.mulf %27, %35 : vector<2x128xf32>
    %cst_18 = arith.constant 5.000000e-01 : f32
    %37 = vector.broadcast %cst_18 : f32 to vector<2x128xf32>
    %38 = arith.subf %10, %37 : vector<2x128xf32>
    %39 = math.log %10 : vector<2x128xf32>
    %40 = arith.mulf %38, %39 : vector<2x128xf32>
    %41 = arith.subf %40, %10 : vector<2x128xf32>
    %cst_19 = arith.constant 0.918938517 : f32
    %42 = vector.broadcast %cst_19 : f32 to vector<2x128xf32>
    %43 = arith.addf %41, %42 : vector<2x128xf32>
    %44 = arith.addf %43, %36 : vector<2x128xf32>
    %45 = math.log %25 : vector<2x128xf32>
    %46 = arith.subf %44, %45 : vector<2x128xf32>
    %47 = arith.subf %3, %4 : vector<2x128xf32>
    %c0_20 = arith.constant 0 : index
    %c0_21 = arith.constant 0 : index
    %48 = vector.load %arg12[%c0_20, %c0_21] : memref<1x128xf32, #tpu.memory_space<vmem>>, vector<1x128xf32>
    %49 = arith.mulf %47, %47 : vector<2x128xf32>
    %cst_22 = arith.constant dense<0.000000e+00> : vector<128xf32>
    %50 = vector.multi_reduction <add>, %49, %cst_22 [0] : vector<2x128xf32> to vector<128xf32>
    %51 = vector.shape_cast %50 : vector<128xf32> to vector<1x128xf32>
    %52 = arith.addf %48, %51 : vector<1x128xf32>
    %c0_23 = arith.constant 0 : index
    %c0_24 = arith.constant 0 : index
    %53 = vector.load %arg12[%c0_23, %c0_24] : memref<1x128xf32, #tpu.memory_space<vmem>>, vector<1x128xf32>
    tpu.vector_store %arg12[%c0_23, %c0_24], %52 {strides = array<i32>} : memref<1x128xf32, #tpu.memory_space<vmem>>, vector<1x128xf32>,
    %c0_25 = arith.constant 0 : index
    %c0_26 = arith.constant 0 : index
    %54 = vector.load %arg13[%c0_25, %c0_26] : memref<1x128xf32, #tpu.memory_space<vmem>>, vector<1x128xf32>
    %cst_27 = arith.constant 9.99999993E-9 : f32
    %55 = vector.broadcast %cst_27 : f32 to vector<2x128xf32>
    %56 = arith.addf %6, %55 : vector<2x128xf32>
    %57 = math.log %56 : vector<2x128xf32>
    %58 = arith.mulf %5, %57 : vector<2x128xf32>
    %cst_28 = arith.constant dense<0.000000e+00> : vector<128xf32>
    %59 = vector.multi_reduction <add>, %58, %cst_28 [0] : vector<2x128xf32> to vector<128xf32>
    %60 = vector.shape_cast %59 : vector<128xf32> to vector<1x128xf32>
    %61 = arith.addf %54, %60 : vector<1x128xf32>
    %c0_29 = arith.constant 0 : index
    %c0_30 = arith.constant 0 : index
    %62 = vector.load %arg13[%c0_29, %c0_30] : memref<1x128xf32, #tpu.memory_space<vmem>>, vector<1x128xf32>
    tpu.vector_store %arg13[%c0_29, %c0_30], %61 {strides = array<i32>} : memref<1x128xf32, #tpu.memory_space<vmem>>, vector<1x128xf32>,
    %c0_31 = arith.constant 0 : index
    %c0_32 = arith.constant 0 : index
    %63 = vector.load %arg14[%c0_31, %c0_32] : memref<1x128xf32, #tpu.memory_space<vmem>>, vector<1x128xf32>
    %cst_33 = arith.constant dense<0.000000e+00> : vector<128xf32>
    %64 = vector.multi_reduction <add>, %5, %cst_33 [0] : vector<2x128xf32> to vector<128xf32>
    %65 = vector.shape_cast %64 : vector<128xf32> to vector<1x128xf32>
    %66 = arith.addf %63, %65 : vector<1x128xf32>
    %c0_34 = arith.constant 0 : index
    %c0_35 = arith.constant 0 : index
    %67 = vector.load %arg14[%c0_34, %c0_35] : memref<1x128xf32, #tpu.memory_space<vmem>>, vector<1x128xf32>
    tpu.vector_store %arg14[%c0_34, %c0_35], %66 {strides = array<i32>} : memref<1x128xf32, #tpu.memory_space<vmem>>, vector<1x128xf32>,
    %c0_36 = arith.constant 0 : index
    %c0_37 = arith.constant 0 : index
    %68 = vector.load %arg15[%c0_36, %c0_37] : memref<1x128xf32, #tpu.memory_space<vmem>>, vector<1x128xf32>
    %cst_38 = arith.constant dense<0.000000e+00> : vector<128xf32>
    %69 = vector.multi_reduction <add>, %6, %cst_38 [0] : vector<2x128xf32> to vector<128xf32>
    %70 = vector.shape_cast %69 : vector<128xf32> to vector<1x128xf32>
    %71 = arith.addf %68, %70 : vector<1x128xf32>
    %c0_39 = arith.constant 0 : index
    %c0_40 = arith.constant 0 : index
    %72 = vector.load %arg15[%c0_39, %c0_40] : memref<1x128xf32, #tpu.memory_space<vmem>>, vector<1x128xf32>
    tpu.vector_store %arg15[%c0_39, %c0_40], %71 {strides = array<i32>} : memref<1x128xf32, #tpu.memory_space<vmem>>, vector<1x128xf32>,
    %c0_41 = arith.constant 0 : index
    %c0_42 = arith.constant 0 : index
    %73 = vector.load %arg16[%c0_41, %c0_42] : memref<1x128xf32, #tpu.memory_space<vmem>>, vector<1x128xf32>
    %cst_43 = arith.constant dense<0.000000e+00> : vector<128xf32>
    %74 = vector.multi_reduction <add>, %46, %cst_43 [0] : vector<2x128xf32> to vector<128xf32>
    %75 = vector.shape_cast %74 : vector<128xf32> to vector<1x128xf32>
    %76 = arith.addf %73, %75 : vector<1x128xf32>
    %c0_44 = arith.constant 0 : index
    %c0_45 = arith.constant 0 : index
    %77 = vector.load %arg16[%c0_44, %c0_45] : memref<1x128xf32, #tpu.memory_space<vmem>>, vector<1x128xf32>
    tpu.vector_store %arg16[%c0_44, %c0_45], %76 {strides = array<i32>} : memref<1x128xf32, #tpu.memory_space<vmem>>, vector<1x128xf32>,
    %c0_i32_46 = arith.constant 0 : i32
    %78 = arith.cmpi eq, %arg0, %c0_i32_46 : i32
    %79 = arith.extui %78 : i1 to i32
    %c0_i32_47 = arith.constant 0 : i32
    %80 = arith.cmpi ne, %79, %c0_i32_47 : i32
    scf.if %80 {
      %c0_48 = arith.constant 0 : index
      %c0_49 = arith.constant 0 : index
      %81 = vector.load %arg12[%c0_48, %c0_49] : memref<1x128xf32, #tpu.memory_space<vmem>>, vector<1x128xf32>
      %82 = vector.shape_cast %81 : vector<1x128xf32> to vector<1x1x128xf32>
      %cst_50 = arith.constant dense<0.000000e+00> : vector<1xf32>
      %83 = vector.multi_reduction <add>, %82, %cst_50 [1, 2] : vector<1x1x128xf32> to vector<1xf32>
      %84 = vector.shape_cast %83 : vector<1xf32> to vector<1x1x1xf32>
      %85 = vector.extract %84[0, 0, 0] : f32 from vector<1x1x1xf32>
      %c0_51 = arith.constant 0 : index
      %c0_52 = arith.constant 0 : index
      %86 = vector.load %arg13[%c0_51, %c0_52] : memref<1x128xf32, #tpu.memory_space<vmem>>, vector<1x128xf32>
      %87 = vector.shape_cast %86 : vector<1x128xf32> to vector<1x1x128xf32>
      %cst_53 = arith.constant dense<0.000000e+00> : vector<1xf32>
      %88 = vector.multi_reduction <add>, %87, %cst_53 [1, 2] : vector<1x1x128xf32> to vector<1xf32>
      %89 = vector.shape_cast %88 : vector<1xf32> to vector<1x1x1xf32>
      %90 = vector.extract %89[0, 0, 0] : f32 from vector<1x1x1xf32>
      %c0_54 = arith.constant 0 : index
      %c0_55 = arith.constant 0 : index
      %91 = vector.load %arg14[%c0_54, %c0_55] : memref<1x128xf32, #tpu.memory_space<vmem>>, vector<1x128xf32>
      %92 = vector.shape_cast %91 : vector<1x128xf32> to vector<1x1x128xf32>
      %cst_56 = arith.constant dense<0.000000e+00> : vector<1xf32>
      %93 = vector.multi_reduction <add>, %92, %cst_56 [1, 2] : vector<1x1x128xf32> to vector<1xf32>
      %94 = vector.shape_cast %93 : vector<1xf32> to vector<1x1x1xf32>
      %95 = vector.extract %94[0, 0, 0] : f32 from vector<1x1x1xf32>
      %c0_57 = arith.constant 0 : index
      %c0_58 = arith.constant 0 : index
      %96 = vector.load %arg15[%c0_57, %c0_58] : memref<1x128xf32, #tpu.memory_space<vmem>>, vector<1x128xf32>
      %97 = vector.shape_cast %96 : vector<1x128xf32> to vector<1x1x128xf32>
      %cst_59 = arith.constant dense<0.000000e+00> : vector<1xf32>
      %98 = vector.multi_reduction <add>, %97, %cst_59 [1, 2] : vector<1x1x128xf32> to vector<1xf32>
      %99 = vector.shape_cast %98 : vector<1xf32> to vector<1x1x1xf32>
      %100 = vector.extract %99[0, 0, 0] : f32 from vector<1x1x1xf32>
      %c0_60 = arith.constant 0 : index
      %c0_61 = arith.constant 0 : index
      %101 = vector.load %arg16[%c0_60, %c0_61] : memref<1x128xf32, #tpu.memory_space<vmem>>, vector<1x128xf32>
      %102 = vector.shape_cast %101 : vector<1x128xf32> to vector<1x1x128xf32>
      %cst_62 = arith.constant dense<0.000000e+00> : vector<1xf32>
      %103 = vector.multi_reduction <add>, %102, %cst_62 [1, 2] : vector<1x1x128xf32> to vector<1xf32>
      %104 = vector.shape_cast %103 : vector<1xf32> to vector<1x1x1xf32>
      %105 = vector.extract %104[0, 0, 0] : f32 from vector<1x1x1xf32>
      %c0_63 = arith.constant 0 : index
      %c0_64 = arith.constant 0 : index
      %106 = vector.load %arg5[%c0_63, %c0_64] : memref<4x128xf32, #tpu.memory_space<vmem>>, vector<4x128xf32>
      %107 = vector.extract_strided_slice %106 {offsets = [0, 0], sizes = [1, 128], strides = [1, 1]} : vector<4x128xf32> to vector<1x128xf32>
      %108 = vector.extract_strided_slice %106 {offsets = [1, 0], sizes = [1, 128], strides = [1, 1]} : vector<4x128xf32> to vector<1x128xf32>
      %109 = vector.extract_strided_slice %106 {offsets = [2, 0], sizes = [1, 128], strides = [1, 1]} : vector<4x128xf32> to vector<1x128xf32>
      %110 = vector.extract_strided_slice %106 {offsets = [3, 0], sizes = [1, 128], strides = [1, 1]} : vector<4x128xf32> to vector<1x128xf32>
      %111 = arith.subf %110, %108 : vector<1x128xf32>
      %112 = arith.subf %108, %110 : vector<1x128xf32>
      %113 = math.exp %112 : vector<1x128xf32>
      %114 = arith.addf %111, %113 : vector<1x128xf32>
      %115 = arith.subf %107, %109 : vector<1x128xf32>
      %116 = arith.mulf %115, %115 : vector<1x128xf32>
      %cst_65 = arith.constant 0.000000e+00 : f32
      %117 = vector.broadcast %cst_65 : f32 to vector<1x128xf32>
      %118 = arith.subf %117, %110 : vector<1x128xf32>
      %119 = math.exp %118 : vector<1x128xf32>
      %120 = arith.mulf %116, %119 : vector<1x128xf32>
      %121 = arith.addf %114, %120 : vector<1x128xf32>
      %cst_66 = arith.constant 1.000000e+00 : f32
      %122 = vector.broadcast %cst_66 : f32 to vector<1x128xf32>
      %123 = arith.subf %121, %122 : vector<1x128xf32>
      %124 = vector.shape_cast %123 : vector<1x128xf32> to vector<1x1x128xf32>
      %cst_67 = arith.constant dense<0.000000e+00> : vector<1xf32>
      %125 = vector.multi_reduction <add>, %124, %cst_67 [1, 2] : vector<1x1x128xf32> to vector<1xf32>
      %126 = vector.shape_cast %125 : vector<1xf32> to vector<1x1x1xf32>
      %127 = vector.extract %126[0, 0, 0] : f32 from vector<1x1x1xf32>
      %c0_68 = arith.constant 0 : index
      %c0_69 = arith.constant 0 : index
      %128 = vector.load %arg6[%c0_68, %c0_69] : memref<4x128xf32, #tpu.memory_space<vmem>>, vector<4x128xf32>
      %129 = vector.extract_strided_slice %128 {offsets = [0, 0], sizes = [1, 128], strides = [1, 1]} : vector<4x128xf32> to vector<1x128xf32>
      %130 = vector.extract_strided_slice %128 {offsets = [1, 0], sizes = [1, 128], strides = [1, 1]} : vector<4x128xf32> to vector<1x128xf32>
      %131 = vector.extract_strided_slice %128 {offsets = [2, 0], sizes = [1, 128], strides = [1, 1]} : vector<4x128xf32> to vector<1x128xf32>
      %132 = vector.extract_strided_slice %128 {offsets = [3, 0], sizes = [1, 128], strides = [1, 1]} : vector<4x128xf32> to vector<1x128xf32>
      %133 = arith.subf %132, %130 : vector<1x128xf32>
      %134 = arith.subf %130, %132 : vector<1x128xf32>
      %135 = math.exp %134 : vector<1x128xf32>
      %136 = arith.addf %133, %135 : vector<1x128xf32>
      %137 = arith.subf %129, %131 : vector<1x128xf32>
      %138 = arith.mulf %137, %137 : vector<1x128xf32>
      %cst_70 = arith.constant 0.000000e+00 : f32
      %139 = vector.broadcast %cst_70 : f32 to vector<1x128xf32>
      %140 = arith.subf %139, %132 : vector<1x128xf32>
      %141 = math.exp %140 : vector<1x128xf32>
      %142 = arith.mulf %138, %141 : vector<1x128xf32>
      %143 = arith.addf %136, %142 : vector<1x128xf32>
      %cst_71 = arith.constant 1.000000e+00 : f32
      %144 = vector.broadcast %cst_71 : f32 to vector<1x128xf32>
      %145 = arith.subf %143, %144 : vector<1x128xf32>
      %146 = vector.shape_cast %145 : vector<1x128xf32> to vector<1x1x128xf32>
      %cst_72 = arith.constant dense<0.000000e+00> : vector<1xf32>
      %147 = vector.multi_reduction <add>, %146, %cst_72 [1, 2] : vector<1x1x128xf32> to vector<1xf32>
      %148 = vector.shape_cast %147 : vector<1xf32> to vector<1x1x1xf32>
      %149 = vector.extract %148[0, 0, 0] : f32 from vector<1x1x1xf32>
      %c0_73 = arith.constant 0 : index
      %c0_74 = arith.constant 0 : index
      %150 = vector.load %arg7[%c0_73, %c0_74] : memref<16x128xf32, #tpu.memory_space<vmem>>, vector<16x128xf32>
      %151 = arith.mulf %150, %150 : vector<16x128xf32>
      %152 = vector.shape_cast %151 : vector<16x128xf32> to vector<1x16x128xf32>
      %cst_75 = arith.constant dense<0.000000e+00> : vector<1xf32>
      %153 = vector.multi_reduction <add>, %152, %cst_75 [1, 2] : vector<1x16x128xf32> to vector<1xf32>
      %154 = vector.shape_cast %153 : vector<1xf32> to vector<1x1x1xf32>
      %155 = vector.extract %154[0, 0, 0] : f32 from vector<1x1x1xf32>
      %c0_76 = arith.constant 0 : index
      %c0_77 = arith.constant 0 : index
      %156 = vector.load %arg8[%c0_76, %c0_77] : memref<8x128xf32, #tpu.memory_space<vmem>>, vector<8x128xf32>
      %157 = arith.mulf %156, %156 : vector<8x128xf32>
      %158 = vector.shape_cast %157 : vector<8x128xf32> to vector<1x8x128xf32>
      %cst_78 = arith.constant dense<0.000000e+00> : vector<1xf32>
      %159 = vector.multi_reduction <add>, %158, %cst_78 [1, 2] : vector<1x8x128xf32> to vector<1xf32>
      %160 = vector.shape_cast %159 : vector<1xf32> to vector<1x1x1xf32>
      %161 = vector.extract %160[0, 0, 0] : f32 from vector<1x1x1xf32>
      %c0_79 = arith.constant 0 : index
      %c0_80 = arith.constant 0 : index
      %162 = vector.load %arg9[%c0_79, %c0_80] : memref<4x128xf32, #tpu.memory_space<vmem>>, vector<4x128xf32>
      %163 = arith.mulf %162, %162 : vector<4x128xf32>
      %164 = vector.shape_cast %163 : vector<4x128xf32> to vector<1x4x128xf32>
      %cst_81 = arith.constant dense<0.000000e+00> : vector<1xf32>
      %165 = vector.multi_reduction <add>, %164, %cst_81 [1, 2] : vector<1x4x128xf32> to vector<1xf32>
      %166 = vector.shape_cast %165 : vector<1xf32> to vector<1x1x1xf32>
      %167 = vector.extract %166[0, 0, 0] : f32 from vector<1x1x1xf32>
      %c0_82 = arith.constant 0 : index
      %c0_83 = arith.constant 0 : index
      %168 = vector.load %arg10[%c0_82, %c0_83] : memref<2x128xf32, #tpu.memory_space<vmem>>, vector<2x128xf32>
      %169 = arith.mulf %168, %168 : vector<2x128xf32>
      %170 = vector.shape_cast %169 : vector<2x128xf32> to vector<1x2x128xf32>
      %cst_84 = arith.constant dense<0.000000e+00> : vector<1xf32>
      %171 = vector.multi_reduction <add>, %170, %cst_84 [1, 2] : vector<1x2x128xf32> to vector<1xf32>
      %172 = vector.shape_cast %171 : vector<1xf32> to vector<1x1x1xf32>
      %173 = vector.extract %172[0, 0, 0] : f32 from vector<1x1x1xf32>
      %174 = tpu.iota {dimensions = array<i32: 0>} : vector<8x128xi32>
      %175 = tpu.iota {dimensions = array<i32: 1>} : vector<8x128xi32>
      %cst_85 = arith.constant 0.000000e+00 : f32
      %176 = vector.broadcast %cst_85 : f32 to vector<8x128xf32>
      %c0_i32_86 = arith.constant 0 : i32
      %177 = vector.broadcast %c0_i32_86 : i32 to vector<8x128xi32>
      %178 = arith.cmpi eq, %174, %177 : vector<8x128xi32>
      %c0_i32_87 = arith.constant 0 : i32
      %179 = vector.broadcast %c0_i32_87 : i32 to vector<8x128xi32>
      %180 = arith.cmpi eq, %175, %179 : vector<8x128xi32>
      %181 = arith.andi %178, %180 : vector<8x128xi1>
      %182 = vector.broadcast %85 : f32 to vector<8x128xf32>
      %183 = arith.select %181, %182, %176 : vector<8x128xi1>, vector<8x128xf32>
      %c0_i32_88 = arith.constant 0 : i32
      %184 = vector.broadcast %c0_i32_88 : i32 to vector<8x128xi32>
      %185 = arith.cmpi eq, %174, %184 : vector<8x128xi32>
      %c1_i32 = arith.constant 1 : i32
      %186 = vector.broadcast %c1_i32 : i32 to vector<8x128xi32>
      %187 = arith.cmpi eq, %175, %186 : vector<8x128xi32>
      %188 = arith.andi %185, %187 : vector<8x128xi1>
      %189 = vector.broadcast %90 : f32 to vector<8x128xf32>
      %190 = arith.select %188, %189, %183 : vector<8x128xi1>, vector<8x128xf32>
      %c0_i32_89 = arith.constant 0 : i32
      %191 = vector.broadcast %c0_i32_89 : i32 to vector<8x128xi32>
      %192 = arith.cmpi eq, %174, %191 : vector<8x128xi32>
      %c2_i32 = arith.constant 2 : i32
      %193 = vector.broadcast %c2_i32 : i32 to vector<8x128xi32>
      %194 = arith.cmpi eq, %175, %193 : vector<8x128xi32>
      %195 = arith.andi %192, %194 : vector<8x128xi1>
      %196 = vector.broadcast %95 : f32 to vector<8x128xf32>
      %197 = arith.select %195, %196, %190 : vector<8x128xi1>, vector<8x128xf32>
      %c0_i32_90 = arith.constant 0 : i32
      %198 = vector.broadcast %c0_i32_90 : i32 to vector<8x128xi32>
      %199 = arith.cmpi eq, %174, %198 : vector<8x128xi32>
      %c3_i32 = arith.constant 3 : i32
      %200 = vector.broadcast %c3_i32 : i32 to vector<8x128xi32>
      %201 = arith.cmpi eq, %175, %200 : vector<8x128xi32>
      %202 = arith.andi %199, %201 : vector<8x128xi1>
      %203 = vector.broadcast %100 : f32 to vector<8x128xf32>
      %204 = arith.select %202, %203, %197 : vector<8x128xi1>, vector<8x128xf32>
      %c0_i32_91 = arith.constant 0 : i32
      %205 = vector.broadcast %c0_i32_91 : i32 to vector<8x128xi32>
      %206 = arith.cmpi eq, %174, %205 : vector<8x128xi32>
      %c4_i32 = arith.constant 4 : i32
      %207 = vector.broadcast %c4_i32 : i32 to vector<8x128xi32>
      %208 = arith.cmpi eq, %175, %207 : vector<8x128xi32>
      %209 = arith.andi %206, %208 : vector<8x128xi1>
      %210 = vector.broadcast %105 : f32 to vector<8x128xf32>
      %211 = arith.select %209, %210, %204 : vector<8x128xi1>, vector<8x128xf32>
      %c0_i32_92 = arith.constant 0 : i32
      %212 = vector.broadcast %c0_i32_92 : i32 to vector<8x128xi32>
      %213 = arith.cmpi eq, %174, %212 : vector<8x128xi32>
      %c5_i32 = arith.constant 5 : i32
      %214 = vector.broadcast %c5_i32 : i32 to vector<8x128xi32>
      %215 = arith.cmpi eq, %175, %214 : vector<8x128xi32>
      %216 = arith.andi %213, %215 : vector<8x128xi1>
      %217 = vector.broadcast %127 : f32 to vector<8x128xf32>
      %218 = arith.select %216, %217, %211 : vector<8x128xi1>, vector<8x128xf32>
      %c0_i32_93 = arith.constant 0 : i32
      %219 = vector.broadcast %c0_i32_93 : i32 to vector<8x128xi32>
      %220 = arith.cmpi eq, %174, %219 : vector<8x128xi32>
      %c6_i32 = arith.constant 6 : i32
      %221 = vector.broadcast %c6_i32 : i32 to vector<8x128xi32>
      %222 = arith.cmpi eq, %175, %221 : vector<8x128xi32>
      %223 = arith.andi %220, %222 : vector<8x128xi1>
      %224 = vector.broadcast %149 : f32 to vector<8x128xf32>
      %225 = arith.select %223, %224, %218 : vector<8x128xi1>, vector<8x128xf32>
      %c0_i32_94 = arith.constant 0 : i32
      %226 = vector.broadcast %c0_i32_94 : i32 to vector<8x128xi32>
      %227 = arith.cmpi eq, %174, %226 : vector<8x128xi32>
      %c7_i32 = arith.constant 7 : i32
      %228 = vector.broadcast %c7_i32 : i32 to vector<8x128xi32>
      %229 = arith.cmpi eq, %175, %228 : vector<8x128xi32>
      %230 = arith.andi %227, %229 : vector<8x128xi1>
      %231 = vector.broadcast %155 : f32 to vector<8x128xf32>
      %232 = arith.select %230, %231, %225 : vector<8x128xi1>, vector<8x128xf32>
      %c0_i32_95 = arith.constant 0 : i32
      %233 = vector.broadcast %c0_i32_95 : i32 to vector<8x128xi32>
      %234 = arith.cmpi eq, %174, %233 : vector<8x128xi32>
      %c8_i32 = arith.constant 8 : i32
      %235 = vector.broadcast %c8_i32 : i32 to vector<8x128xi32>
      %236 = arith.cmpi eq, %175, %235 : vector<8x128xi32>
      %237 = arith.andi %234, %236 : vector<8x128xi1>
      %238 = vector.broadcast %161 : f32 to vector<8x128xf32>
      %239 = arith.select %237, %238, %232 : vector<8x128xi1>, vector<8x128xf32>
      %c0_i32_96 = arith.constant 0 : i32
      %240 = vector.broadcast %c0_i32_96 : i32 to vector<8x128xi32>
      %241 = arith.cmpi eq, %174, %240 : vector<8x128xi32>
      %c9_i32 = arith.constant 9 : i32
      %242 = vector.broadcast %c9_i32 : i32 to vector<8x128xi32>
      %243 = arith.cmpi eq, %175, %242 : vector<8x128xi32>
      %244 = arith.andi %241, %243 : vector<8x128xi1>
      %245 = vector.broadcast %167 : f32 to vector<8x128xf32>
      %246 = arith.select %244, %245, %239 : vector<8x128xi1>, vector<8x128xf32>
      %c0_i32_97 = arith.constant 0 : i32
      %247 = vector.broadcast %c0_i32_97 : i32 to vector<8x128xi32>
      %248 = arith.cmpi eq, %174, %247 : vector<8x128xi32>
      %c10_i32 = arith.constant 10 : i32
      %249 = vector.broadcast %c10_i32 : i32 to vector<8x128xi32>
      %250 = arith.cmpi eq, %175, %249 : vector<8x128xi32>
      %251 = arith.andi %248, %250 : vector<8x128xi1>
      %252 = vector.broadcast %173 : f32 to vector<8x128xf32>
      %253 = arith.select %251, %252, %246 : vector<8x128xi1>, vector<8x128xf32>
      %c0_98 = arith.constant 0 : index
      %c0_99 = arith.constant 0 : index
      %254 = vector.load %arg11[%c0_98, %c0_99] : memref<8x128xf32, #tpu.memory_space<vmem>>, vector<8x128xf32>
      tpu.vector_store %arg11[%c0_98, %c0_99], %253 {strides = array<i32>} : memref<8x128xf32, #tpu.memory_space<vmem>>, vector<8x128xf32>,
    } else {
    }
    return
  }
  func.func @transform_0(%arg0: i32) -> (i32, i32) {
    %c0_i32 = arith.constant 0 : i32
    %c0_i32_0 = arith.constant 0 : i32
    return %arg0, %c0_i32 : i32, i32
  }
  func.func @transform_1(%arg0: i32) -> (i32, i32) {
    %c0_i32 = arith.constant 0 : i32
    %c0_i32_0 = arith.constant 0 : i32
    return %arg0, %c0_i32 : i32, i32
  }
  func.func @transform_2(%arg0: i32) -> (i32, i32) {
    %c0_i32 = arith.constant 0 : i32
    %c0_i32_0 = arith.constant 0 : i32
    return %arg0, %c0_i32 : i32, i32
  }
  func.func @transform_3(%arg0: i32) -> (i32, i32) {
    %c0_i32 = arith.constant 0 : i32
    %c0_i32_0 = arith.constant 0 : i32
    return %arg0, %c0_i32 : i32, i32
  }
  func.func @transform_4(%arg0: i32) -> (i32, i32) {
    %c0_i32 = arith.constant 0 : i32
    %c0_i32_0 = arith.constant 0 : i32
    %c0_i32_1 = arith.constant 0 : i32
    return %c0_i32, %c0_i32_0 : i32, i32
  }
  func.func @transform_5(%arg0: i32) -> (i32, i32) {
    %c0_i32 = arith.constant 0 : i32
    %c0_i32_0 = arith.constant 0 : i32
    %c0_i32_1 = arith.constant 0 : i32
    return %c0_i32, %c0_i32_0 : i32, i32
  }
  func.func @transform_6(%arg0: i32) -> (i32, i32) {
    %c0_i32 = arith.constant 0 : i32
    %c0_i32_0 = arith.constant 0 : i32
    %c0_i32_1 = arith.constant 0 : i32
    return %c0_i32, %c0_i32_0 : i32, i32
  }
  func.func @transform_7(%arg0: i32) -> (i32, i32) {
    %c0_i32 = arith.constant 0 : i32
    %c0_i32_0 = arith.constant 0 : i32
    %c0_i32_1 = arith.constant 0 : i32
    return %c0_i32, %c0_i32_0 : i32, i32
  }
  func.func @transform_8(%arg0: i32) -> (i32, i32) {
    %c0_i32 = arith.constant 0 : i32
    %c0_i32_0 = arith.constant 0 : i32
    %c0_i32_1 = arith.constant 0 : i32
    return %c0_i32, %c0_i32_0 : i32, i32
  }
  func.func @transform_9(%arg0: i32) -> (i32, i32) {
    %c0_i32 = arith.constant 0 : i32
    %c0_i32_0 = arith.constant 0 : i32
    %c0_i32_1 = arith.constant 0 : i32
    return %c0_i32, %c0_i32_0 : i32, i32
  }
  func.func @transform_10(%arg0: i32) -> (i32, i32) {
    %c0_i32 = arith.constant 0 : i32
    %c0_i32_0 = arith.constant 0 : i32
    %c0_i32_1 = arith.constant 0 : i32
    return %c0_i32, %c0_i32_0 : i32, i32
  }
}

</mosaic_0001>

<bundles_post_ra>
// kernel: svlae_loss_terms.1
= control target key start
LH: loop header
LB: loop body
LE: loop exit
PB: predicated region body
PF: predicated region fallthrough
CT: control target
= control target key end

     0   :  { %v420_v0 = vmov 0.0   ;;  %vm81_vm0 = vcmask 1041408   ;;  %vm139_vm1 = vcmask 1040384   ;;  %vm301_vm2 = vcmask 1043456   ;;  %s561_s0 = inlined_call_operand.vmem [shape: f32[2,128], index: 0, kind: input, shape index: {}]   ;;  %s562_s1 = inlined_call_operand.vmem [shape: f32[2,128], index: 1, kind: input, shape index: {}]   ;;  %s563_s6 = inlined_call_operand.vmem [shape: f32[16,128], index: 6, kind: input, shape index: {}]   ;;  %s564_s5 = inlined_call_operand.vmem [shape: f32[4,128], index: 5, kind: input, shape index: {}]   ;;  %s565_s2 = inlined_call_operand.vmem [shape: f32[2,128], index: 2, kind: input, shape index: {}]   ;;  %s566_s3 = inlined_call_operand.vmem [shape: f32[2,128], index: 3, kind: input, shape index: {}]   ;;  %s567_s4 = inlined_call_operand.vmem [shape: f32[4,128], index: 4, kind: input, shape index: {}]   ;;  %s568_s8 = inlined_call_operand.vmem [shape: f32[4,128], index: 8, kind: input, shape index: {}]   ;;  %s569_s7 = inlined_call_operand.vmem [shape: f32[8,128], index: 7, kind: input, shape index: {}]   ;;  %s570_s9 = inlined_call_operand.vmem [shape: f32[2,128], index: 9, kind: input, shape index: {}]   ;;  %s571_s10 = inlined_call_operand.vmem [shape: f32[8,128], index: 10, kind: output, shape index: {}]  }
   0x1   :  { %39 = vst [vmem:[#allocation2] sm:$0x1] %v420_v0  ;;  %v44_v1 = vld [vmem:[%s561_s0] sm:$0x3]  ;;  %40 = vst [vmem:[#allocation3] sm:$0x1] %v420_v0 }
   0x2   :  { %v45_v2 = vld [vmem:[%s562_s1] sm:$0x3]  ;;  %41 = vst [vmem:[#allocation4] sm:$0x1] %v420_v0  ;;  %42 = vst [vmem:[#allocation5] sm:$0x1] %v420_v0 }
   0x3   :  { %43 = vst [vmem:[#allocation6] sm:$0x1] %v420_v0  ;;  %v274_v3 = vld [vmem:[%s563_s6] sm:$0xff]  ;;  %v78_v4 = vsub.f32 %v44_v1, %v45_v2  ;;  %v275_v5 = vld [vmem:[%s563_s6 + $0x8] sm:$0xff] }
   0x4   :  { %v276_v6 = vmul.f32 %v274_v3, %v274_v3  ;;  %v491_v7 = vld [vmem:[%s564_s5] sm:$0xf]  ;;  %v277_v8 = vmul.f32 %v275_v5, %v275_v5 }
   0x5   :  { %v239_v9 = vrot.slane %v491_v7, 2  ;;  %v249_v10 = vsub.f32 0.0, %v491_v7  ;;  %v498_v11 = vld [vmem:[%s565_s2] sm:$0x3]  ;;  %v80_v13 = vmul.f32 %v78_v4, %v78_v4  ;;  %v236_v52 = vrot.slane %v491_v7, 6 }
   0x6   :  { %v47_v12 = vld [vmem:[%s566_s3] sm:$0x3]  ;;  %v106_v14 = vsel %vm81_vm0, %v498_v11, 0.0  ;;  %v278_v16 = vadd.f32 %v277_v8, %v276_v6  ;;  %v48_v24 = vadd.f32 1.0, %v498_v11 }
   0x7   :  { %v92_v15 = vadd.f32 1e-08, %v47_v12  ;;  %v241_v17 = vsub.f32 %v491_v7, %v239_v9  ;;  %v250_v18 = vmul.f32 1.442695, %v249_v10  ;;  %v82_v19 = vsel %vm81_vm0, %v80_v13, 0.0 }
   0x8   :  { %v107_v20 = vrot.slane %v106_v14, 4  ;;  %v116_v21 = vsel %vm81_vm0, %v47_v12, 0.0  ;;  %v83_v22 = vrot.slane %v82_v19, 4  ;;  %279 = vadd.xlane.f32.xlu1 %v278_v16  ;;  %v512_v25 = vld [vmem:[%s567_s4] sm:$0xf]  ;;  %v516_v34 = vadd.f32 6.0, %v48_v24 }
   0x9   :  { %404 = vlog2.f32 %v92_v15  ;;  %v242_v23 = vmul.f32 1.442695, %v241_v17  ;;  %v117_v28 = vrot.slane %v116_v21, 4  ;;  %v199_v30 = vrot.slane %v512_v25, 2  ;;  %v105_v47 = vld [vmem:[#allocation4] sm:$0x1] }
   0xa   :  { %406 = vpow2.f32 %v250_v18  ;;  %v108_v26 = vadd.f32 %v107_v20, %v106_v14  ;;  %v84_v27 = vadd.f32 %v83_v22, %v82_v19  ;;  %v209_v31 = vsub.f32 0.0, %v512_v25  ;;  %v79_v51 = vld [vmem:[#allocation2] sm:$0x1]  ;;  %v115_v59 = vld [vmem:[#allocation5] sm:$0x1] }
   0xb   :  { %408 = vpow2.f32 %v242_v23  ;;  %v118_v33 = vadd.f32 %v117_v28, %v116_v21  ;;  %v50_v35 = vadd.f32 1.0, %v48_v24  ;;  %v201_v37 = vsub.f32 %v512_v25, %v199_v30 }
   0xc   :  { %v109_v29 = vrot.slane %v108_v26, 2  ;;  %v85_v32 = vrot.slane %v84_v27, 2  ;;  %v210_v38 = vmul.f32 1.442695, %v209_v31  ;;  %v52_v39 = vadd.f32 2.0, %v48_v24 }
   0xd   :  { %v119_v41 = vrot.slane %v118_v33, 2  ;;  %v51_v42 = vmul.f32 %v50_v35, %v48_v24  ;;  %v54_v43 = vadd.f32 3.0, %v48_v24  ;;  %v202_v45 = vmul.f32 1.442695, %v201_v37 }
   0xe   :  { %v110_v36 = vadd.f32 %v109_v29, %v108_v26  ;;  %v86_v40 = vadd.f32 %v85_v32, %v84_v27  ;;  %410 = vpow2.f32 %v210_v38  ;;  %v56_v50 = vadd.f32 4.0, %v48_v24 }
   0xf   :  { %v120_v48 = vadd.f32 %v119_v41, %v118_v33  ;;  %v53_v49 = vmul.f32 %v52_v39, %v51_v42  ;;  %412 = vpow2.f32 %v202_v45  ;;  %v58_v54 = vadd.f32 5.0, %v48_v24 }
  0x10   :  { %v111_v44 = vrot.slane %v110_v36, 1  ;;  %v87_v46 = vrot.slane %v86_v40, 1  ;;  %414 = vrcp.f32 %v516_v34  ;;  %v248_v62 = vmul.f32 %v241_v17, %v241_v17 }
  0x11   :  { %v121_v56 = vrot.slane %v120_v48, 1  ;;  %v55_v57 = vmul.f32 %v54_v43, %v53_v49  ;;  %416 = vlog2.f32 %v516_v34  ;;  %v238_v3 = vsub.f32 %v491_v7, %v236_v52 }
  0x12   :  { %v112_v53 = vadd.f32 %v111_v44, %v110_v36  ;;  %v88_v55 = vadd.f32 %v87_v46, %v86_v40  ;;  %v196_v14 = vrot.slane %v512_v25, 6  ;;  %v208_v18 = vmul.f32 %v201_v37, %v201_v37  ;;  %v91_v46 = vld [vmem:[#allocation3] sm:$0x1] }
  0x13   :  { %v122_v63 = vadd.f32 %v121_v56, %v120_v48  ;;  %v57_v0 = vmul.f32 %v56_v50, %v55_v57  ;;  %v378_v35 = vadd.f32 -0.5, %v516_v34 }
  0x14   :  { %v113_v58 = vadd.f32 %v112_v53, %v105_v47  ;;  %v89_v61 = vadd.f32 %v88_v55, %v79_v51  ;;  %v198_v23 = vsub.f32 %v512_v25, %v196_v14  ;;  %v299_v51 = vld [vmem:[%s568_s8] sm:$0xf] }
  0x15   :  { %v123_v5 = vadd.f32 %v122_v63, %v115_v59  ;;  %v59_v6 = vmul.f32 %v58_v54, %v57_v0 }
  0x16   :  { %v405_v60 = vpop.eup %404  ;;  %114 = vst [vmem:[#allocation4] sm:$0x1] %v113_v58  ;;  %90 = vst [vmem:[#allocation2] sm:$0x1] %v89_v61  ;;  %v300_v58 = vmul.f32 %v299_v51, %v299_v51 }
  0x17   :  { %v407_v1 = vpop.eup %406  ;;  %v94_v2 = vmul.f32 0.6931472, %v405_v60  ;;  %124 = vst [vmem:[#allocation5] sm:$0x1] %v123_v5  ;;  %418 = vlog2.f32 %v59_v6 }
  0x18   :  { %v253_v4 = vrot.slane %v407_v1, 3  ;;  %v409_v8 = vpop.eup %408  ;;  %v302_v0 = vsel %vm301_vm2, %v300_v58, 0.0 }
  0x19   :  { %v95_v9 = vmul.f32 %v94_v2, %v498_v11  ;;  %v245_v10 = vrot.slane %v409_v8, 6 }
  0x1a   :  { %v255_v12 = vmul.f32 %v253_v4, %v248_v62 }
  0x1b   :  { %v96_v13 = vsel %vm81_vm0, %v95_v9, 0.0  ;;  %v247_v15 = vadd.f32 %v245_v10, %v238_v3  ;;  %v411_v7 = vpop.eup %410 }
  0x1c   :  { %v257_v16 = vrot.slane %v255_v12, 5  ;;  %v97_v17 = vrot.slane %v96_v13, 4  ;;  %v213_v24 = vrot.slane %v411_v7, 3  ;;  %v413_v26 = vpop.eup %412  ;;  %v125_v12 = vld [vmem:[#allocation6] sm:$0x1] }
  0x1d   :  { %v161_v20 = vld [vmem:[#allocation4] sm:$0x1]  ;;  %v138_v22 = vld [vmem:[#allocation2] sm:$0x1]  ;;  %v415_v30 = vpop.eup %414  ;;  %v205_v32 = vrot.slane %v413_v26, 6 }
  0x1e   :  { %v259_v19 = vadd.f32 %v257_v16, %v247_v15  ;;  %v98_v21 = vadd.f32 %v97_v17, %v96_v13  ;;  %v162_v11 = vsel %vm139_vm1, %v161_v20, 0.0  ;;  %v140_v27 = vsel %vm139_vm1, %v138_v22, 0.0  ;;  %v172_v31 = vld [vmem:[#allocation5] sm:$0x1]  ;;  %v417_v36 = vpop.eup %416  ;;  %v312_v17 = vld [vmem:[%s570_s9] sm:$0x3] }
  0x1f   :  { %163 = vadd.xlane.f32.xlu1 %v162_v11  ;;  %141 = vadd.xlane.f32.xlu0 %v140_v27  ;;  %v215_v33 = vmul.f32 %v213_v24, %v208_v18  ;;  %v173_v39 = vsel %vm139_vm1, %v172_v31, 0.0  ;;  %v62_v25 = vmul.f32 %v415_v30, %v415_v30  ;;  %v207_v40 = vadd.f32 %v205_v32, %v198_v23  ;;  %v288_v15 = vld [vmem:[%s569_s7] sm:$0xff] }
  0x20   :  { %v380_v28 = vadd.f32 -1.0, %v259_v19  ;;  %v99_v29 = vrot.slane %v98_v21, 2  ;;  %v70_v42 = vmul.f32 0.6931472, %v417_v36  ;;  %v289_v7 = vmul.f32 %v288_v15, %v288_v15 }
  0x21   :  { %v217_v41 = vrot.slane %v215_v33, 5  ;;  %v63_v45 = vmul.f32 0.0007936508, %v62_v25  ;;  %v313_v19 = vmul.f32 %v312_v17, %v312_v17 }
  0x22   :  { %v262_v37 = vrot.slane %v380_v28, 3  ;;  %v100_v38 = vadd.f32 %v99_v29, %v98_v21  ;;  %v71_v48 = vmul.f32 %v378_v35, %v70_v42 }
  0x23   :  { %174 = vadd.xlane.f32.xlu1 %v173_v39  ;;  %v219_v47 = vadd.f32 %v217_v41, %v207_v40  ;;  %v64_v50 = vsub.f32 0.0027777778, %v63_v45  ;;  %v314_v20 = vsel %vm81_vm0, %v313_v19, 0.0 }
  0x24   :  { %v264_v43 = vsel %vm139_vm1, %v262_v37, 0.0  ;;  %v101_v44 = vrot.slane %v100_v38, 1  ;;  %v72_v53 = vsub.f32 %v71_v48, %v516_v34  ;;  %v419_v56 = vpop.eup %418 }
  0x25   :  { %265 = vadd.xlane.f32.xlu0 %v264_v43  ;;  %v379_v52 = vadd.f32 -1.0, %v219_v47  ;;  %v65_v55 = vmul.f32 %v64_v50, %v62_v25  ;;  %v76_v63 = vmul.f32 0.6931472, %v419_v56 }
  0x26   :  { %v102_v49 = vadd.f32 %v101_v44, %v100_v38  ;;  %v73_v60 = vadd.f32 0.9189385, %v72_v53 }
  0x27   :  { %v222_v57 = vrot.slane %v379_v52, 3  ;;  %v66_v59 = vsub.f32 0.083333336, %v65_v55 }
  0x28   :  { %v103_v54 = vadd.f32 %v102_v49, %v91_v46 }
  0x29   :  { %v224_v61 = vsel %vm139_vm1, %v222_v57, 0.0  ;;  %v67_v62 = vmul.f32 %v415_v30, %v66_v59 }
  0x2a   :  { %104 = vst [vmem:[#allocation3] sm:$0x1] %v103_v54  ;;  %225 = vadd.xlane.f32.xlu1 %v224_v61 }
  0x2b   :  { %v74_v1 = vadd.f32 %v73_v60, %v67_v62 }
  0x2d   :  { %v77_v2 = vsub.f32 %v74_v1, %v76_v63 }
  0x2e   :  { %303 = vadd.xlane.f32.xlu1 %v302_v0 }
  0x2f   :  { %v126_v4 = vsel %vm81_vm0, %v77_v2, 0.0 }
  0x30   :  { %v127_v5 = vrot.slane %v126_v4, 4 }
  0x31   :  { %v150_v3 = vld [vmem:[#allocation3] sm:$0x1] }
  0x32   :  { %v151_v34 = vsel %vm139_vm1, %v150_v3, 0.0  ;;  %v128_v6 = vadd.f32 %v127_v5, %v126_v4 }
  0x33   :  { %152 = vadd.xlane.f32.xlu0 %v151_v34 }
  0x34   :  { %v129_v8 = vrot.slane %v128_v6, 2 }
  0x36   :  { %v130_v9 = vadd.f32 %v129_v8, %v128_v6 }
  0x38   :  { %v131_v10 = vrot.slane %v130_v9, 1 }
  0x3a   :  { %v132_v13 = vadd.f32 %v131_v10, %v130_v9 }
  0x3c   :  { %v133_v14 = vadd.f32 %v132_v13, %v125_v12 }
  0x3e   :  { %134 = vst [vmem:[#allocation6] sm:$0x1] %v133_v14 }
  0x45   :  { %v183_v16 = vld [vmem:[#allocation6] sm:$0x1] }
  0x46   :  { %v184_v18 = vsel %vm139_vm1, %v183_v16, 0.0 }
  0x47   :  { %185 = vadd.xlane.f32.xlu0 %v184_v18 }
  0x4b   :  { %290 = vadd.xlane.f32.xlu0 %v289_v7 }
  0x4f   :  { %315 = vadd.xlane.f32.xlu0 %v314_v20 }
  0x91   :  { %v280_v21 = vpop.xlane.xlu1 %279 }
  0x92   :  { %v281_v55 = vrot.slane %v280_v21, 4 }
  0x94   :  { %v282_v59 = vadd.f32 %v281_v55, %v280_v21 }
  0x96   :  { %v283_v1 = vrot.slane %v282_v59, 2 }
  0x98   :  { %v284_v9 = vadd.f32 %v283_v1, %v282_v59 }
  0x9a   :  { %v285_v19 = vrot.slane %v284_v9, 1 }
  0xa8   :  { %v142_v22 = vpop.xlane.xlu0 %141  ;;  %v164_v11 = vpop.xlane.xlu1 %163 }
  0xa9   :  { %v143_v23 = vrot.slane %v142_v22, 4  ;;  %v165_v29 = vrot.slane %v164_v11, 4 }
  0xab   :  { %v144_v24 = vadd.f32 %v143_v23, %v142_v22  ;;  %v166_v35 = vadd.f32 %v165_v29, %v164_v11 }
  0xac   :  { %v175_v27 = vpop.xlane.xlu1 %174 }
  0xad   :  { %v145_v26 = vrot.slane %v144_v24, 2  ;;  %v176_v30 = vrot.slane %v175_v27, 4  ;;  %v167_v37 = vrot.slane %v166_v35, 2 }
  0xae   :  { %v266_v33 = vpop.xlane.xlu0 %265 }
  0xaf   :  { %v146_v28 = vadd.f32 %v145_v26, %v144_v24  ;;  %v177_v36 = vadd.f32 %v176_v30, %v175_v27  ;;  %v168_v40 = vadd.f32 %v167_v37, %v166_v35  ;;  %v267_v53 = vrot.slane %v266_v33, 4 }
  0xb0   :  { %v324_v35 = vlaneseq }
  0xb1   :  { %v147_v31 = vrot.slane %v146_v28, 1  ;;  %v178_v38 = vrot.slane %v177_v36, 2  ;;  %v169_v44 = vrot.slane %v168_v40, 1  ;;  %v268_v58 = vadd.f32 %v267_v53, %v266_v33 }
  0xb2   :  { %v327_v37 = vand.u32 127, %v324_v35 }
  0xb3   :  { %v148_v32 = vadd.f32 %v147_v31, %v146_v28  ;;  %v179_v42 = vadd.f32 %v178_v38, %v177_v36  ;;  %v226_v48 = vpop.xlane.xlu1 %225  ;;  %v170_v49 = vadd.f32 %v169_v44, %v168_v40  ;;  %v269_v63 = vrot.slane %v268_v58, 2 }
  0xb4   :  { %v227_v52 = vrot.slane %v226_v48, 4  ;;  %v286_v28 = vadd.f32 %v285_v19, %v284_v9  ;;  %v325_v36 = vshrl.u32 %v324_v35, 7  ;;  %vm329_vm4 = vcmp.eq.s32.totalorder %v327_v37, 0 }
  0xb5   :  { %381 = vpush %v148_v32  ;;  %v180_v46 = vrot.slane %v179_v42, 1  ;;  %v270_v8 = vadd.f32 %v269_v63, %v268_v58  ;;  %vm333_vm5 = vcmp.eq.s32.totalorder %v327_v37, 1  ;;  %vm337_vm8 = vcmp.eq.s32.totalorder %v327_v37, 2 }
  0xb6   :  { %v228_v56 = vadd.f32 %v227_v52, %v226_v48  ;;  %vm328_vm3 = vcmp.eq.s32.totalorder %v325_v36, 0  ;;  %vm341_vm10 = vcmp.eq.s32.totalorder %v327_v37, 3  ;;  %vm345_vm11 = vcmp.eq.s32.totalorder %v327_v37, 4 }
  0xb7   :  { %v181_v51 = vadd.f32 %v180_v46, %v179_v42  ;;  %v304_v54 = vpop.xlane.xlu1 %303  ;;  %v271_v7 = vrot.slane %v270_v8, 1  ;;  %vm330_vm6 = vmand %vm328_vm3, %vm329_vm4  ;;  %vm349_vm12 = vcmp.eq.s32.totalorder %v327_v37, 5  ;;  %vm353_vm14 = vcmp.eq.s32.totalorder %v327_v37, 6 }
  0xb8   :  { %v305_v57 = vrot.slane %v304_v54, 4  ;;  %v229_v60 = vrot.slane %v228_v56, 2  ;;  %vm334_vm7 = vmand %vm328_vm3, %vm333_vm5  ;;  %vm357_vm0 = vcmp.eq.s32.totalorder %v327_v37, 7  ;;  %vm361_vm2 = vcmp.eq.s32.totalorder %v327_v37, 8 }
  0xb9   :  { %v272_v26 = vadd.f32 %v271_v7, %v270_v8  ;;  %vm338_vm9 = vmand %vm328_vm3, %vm337_vm8  ;;  %vm369_vm8 = vcmp.eq.s32.totalorder %v327_v37, 10 }
  0xba   :  { %v306_v62 = vadd.f32 %v305_v57, %v304_v54  ;;  %v230_v4 = vadd.f32 %v229_v60, %v228_v56  ;;  %vm342_vm13 = vmand %vm328_vm3, %vm341_vm10 }
  0xbb   :  { %vm346_vm15 = vmand %vm328_vm3, %vm345_vm11 }
  0xbc   :  { %v153_v39 = vpop.xlane.xlu0 %152  ;;  %v307_v3 = vrot.slane %v306_v62, 2  ;;  %v231_v15 = vrot.slane %v230_v4, 1  ;;  %vm350_vm1 = vmand %vm328_vm3, %vm349_vm12 }
  0xbd   :  { %v154_v25 = vrot.slane %v153_v39, 4  ;;  %vm354_vm4 = vmand %vm328_vm3, %vm353_vm14 }
  0xbe   :  { %v308_v13 = vadd.f32 %v307_v3, %v306_v62  ;;  %v232_v11 = vadd.f32 %v231_v15, %v230_v4  ;;  %vm358_vm5 = vmand %vm328_vm3, %vm357_vm0 }
  0xbf   :  { %v155_v41 = vadd.f32 %v154_v25, %v153_v39  ;;  %vm370_vm10 = vmand %vm328_vm3, %vm369_vm8 }
  0xc0   :  { %v309_v23 = vrot.slane %v308_v13, 1 }
  0xc1   :  { %v156_v43 = vrot.slane %v155_v41, 2 }
  0xc2   :  { %v310_v31 = vadd.f32 %v309_v23, %v308_v13 }
  0xc3   :  { %v157_v45 = vadd.f32 %v156_v43, %v155_v41 }
  0xc5   :  { %v158_v47 = vrot.slane %v157_v45, 1 }
  0xc7   :  { %v159_v50 = vadd.f32 %v158_v47, %v157_v45 }
  0xc9   :  { %383 = vpush %v159_v50 }
  0xca   :  { %385 = vpush %v170_v49 }
  0xcb   :  { %387 = vpush %v181_v51 }
  0xd0   :  { %v186_v61 = vpop.xlane.xlu0 %185 }
  0xd1   :  { %v187_v0 = vrot.slane %v186_v61, 4 }
  0xd3   :  { %v188_v2 = vadd.f32 %v187_v0, %v186_v61 }
  0xd4   :  { %v291_v34 = vpop.xlane.xlu0 %290 }
  0xd5   :  { %v189_v5 = vrot.slane %v188_v2, 2  ;;  %v292_v6 = vrot.slane %v291_v34, 4 }
  0xd7   :  { %v293_v10 = vadd.f32 %v292_v6, %v291_v34  ;;  %v190_v12 = vadd.f32 %v189_v5, %v188_v2 }
  0xd8   :  { %v316_v14 = vpop.xlane.xlu0 %315 }
  0xd9   :  { %v294_v16 = vrot.slane %v293_v10, 2  ;;  %v317_v17 = vrot.slane %v316_v14, 4  ;;  %v191_v18 = vrot.slane %v190_v12, 1 }
  0xdb   :  { %v318_v20 = vadd.f32 %v317_v17, %v316_v14  ;;  %v192_v21 = vadd.f32 %v191_v18, %v190_v12  ;;  %v295_v22 = vadd.f32 %v294_v16, %v293_v10 }
  0xdd   :  { %v319_v24 = vrot.slane %v318_v20, 2  ;;  %389 = vpush %v192_v21  ;;  %v296_v27 = vrot.slane %v295_v22, 1 }
  0xde   :  { %391 = vpush %v232_v11 }
  0xdf   :  { %v320_v29 = vadd.f32 %v319_v24, %v318_v20  ;;  %393 = vpush %v272_v26  ;;  %v297_v30 = vadd.f32 %v296_v27, %v295_v22 }
  0xe0   :  { %395 = vpush %v286_v28 }
  0xe1   :  { %397 = vpush %v297_v30  ;;  %v321_v32 = vrot.slane %v320_v29, 1 }
  0xe2   :  { %399 = vpush %v310_v31 }
  0xe3   :  { %v322_v33 = vadd.f32 %v321_v32, %v320_v29 }
  0xe5   :  { %401 = vpush %v322_v33 }
  0xe6   :  { %s382_s7 = spop %381 }
  0xe7   :  { %v331_v38 = vstv %s382_s7 }
  0xe8   :  { %v332_v25 = vsel %vm330_vm6, %v331_v38, 0.0  ;;  %vm362_vm6 = vmand %vm328_vm3, %vm361_vm2 }
  0xfa   :  { %s384_s9 = spop %383 }
  0xfb   :  { %v335_v39 = vstv %s384_s9  ;;  %s386_s27 = spop %385 }
  0xfc   :  { %v336_v40 = vsel %vm334_vm7, %v335_v39, %v332_v25  ;;  %v339_v41 = vstv %s386_s27  ;;  %s388_s28 = spop %387  ;;  %vm365_vm7 = vcmp.eq.s32.totalorder %v327_v37, 9 }
  0xfd   :  { %v340_v42 = vsel %vm338_vm9, %v339_v41, %v336_v40  ;;  %v343_v43 = vstv %s388_s28  ;;  %vm366_vm9 = vmand %vm328_vm3, %vm365_vm7 }
  0xfe   :  { %v344_v44 = vsel %vm342_vm13, %v343_v43, %v340_v42 }
 0x10e   :  { %s390_s29 = spop %389 }
 0x10f   :  { %v347_v45 = vstv %s390_s29  ;;  %s392_s30 = spop %391 }
 0x110   :  { %v348_v46 = vsel %vm346_vm15, %v347_v45, %v344_v44  ;;  %v351_v47 = vstv %s392_s30  ;;  %s394_s11 = spop %393 }
 0x111   :  { %v352_v48 = vsel %vm350_vm1, %v351_v47, %v348_v46  ;;  %v355_v49 = vstv %s394_s11  ;;  %s396_s12 = spop %395 }
 0x112   :  { %v356_v50 = vsel %vm354_vm4, %v355_v49, %v352_v48  ;;  %v359_v51 = vstv %s396_s12  ;;  %s398_s13 = spop %397 }
 0x113   :  { %v360_v52 = vsel %vm358_vm5, %v359_v51, %v356_v50  ;;  %v363_v53 = vstv %s398_s13  ;;  %s400_s14 = spop %399 }
 0x114   :  { %v364_v54 = vsel %vm362_vm6, %v363_v53, %v360_v52  ;;  %v367_v55 = vstv %s400_s14 }
 0x115   :  { %v368_v56 = vsel %vm366_vm9, %v367_v55, %v364_v54 }
 0x116   :  { %s402_s15 = spop %401 }
 0x117   :  { %v371_v57 = vstv %s402_s15 }
 0x118   :  { %v372_v58 = vsel %vm370_vm10, %v371_v57, %v368_v56 }
 0x119   :  { %373 = vst [vmem:[%s571_s10] sm:$0xff] %v372_v58 }

</bundles_post_ra>
